<compile_context>
chip_gen: v5e
topology: v5e:2x2
jax: 0.10.0
libtpu: 0.0.40
codegen_flags: <defaults>
</compile_context>

<pallas_src>
import jax
import jax.numpy as jnp
from jax import lax
from jax.experimental import pallas as pl
from jax.experimental.pallas import tpu as pltpu

INPUT_SIZE = 32            # "input_size" ctor arg of OptimizedNN
H1, H2, H3, OUT = 256, 128, 64, 1


def mlp_kernel(x_ref,
               w1_ref, b1_ref,
               w2_ref, b2_ref,
               w3_ref, b3_ref,
               w4_ref, b4_ref,
               o_ref):
    # x tile arrives in native (TB, F) f32 layout; cast to bf16 and contract the
    # feature axis of both operands (NT matmul, same form as Q@K^T), so no
    # wrapper-side transpose/cast copy of x ever hits HBM.  The result is
    # lane-dense (H1, TB): batch on the 128-wide lane axis for the whole kernel.
    xb = x_ref[...].astype(jnp.bfloat16)                          # (TB, F)
    h = lax.dot_general(w1_ref[...], xb,
                        dimension_numbers=(((1,), (1,)), ((), ())),
                        preferred_element_type=jnp.float32)       # (H1, TB) f32
    # Bias + ReLU on the VPU; bf16 downcast fused so the large activations
    # live/spill as bf16 instead of f32.
    h = jnp.maximum(h + b1_ref[...], 0.0).astype(jnp.bfloat16)    # (H1, TB) bf16
    # fc2 + relu
    h = jnp.dot(w2_ref[...], h, preferred_element_type=jnp.float32)
    h = jnp.maximum(h + b2_ref[...], 0.0).astype(jnp.bfloat16)    # (H2, TB) bf16
    # dropout(p=0.5): identity in eval/inference mode (matches model.eval()).
    # TODO(synk): training-mode dropout would need pltpu.prng_seed/prng_random_bits.
    # fc3 + relu (stays f32 for the exact f32 epilogue).
    h = jnp.dot(w3_ref[...], h, preferred_element_type=jnp.float32)
    h = jnp.maximum(h + b3_ref[...], 0.0)                         # (H3, TB) f32
    # fc4 (64 -> 1): VPU multiply + XLU sublane reduction (no N=1 MXU push);
    # b4 comes from SMEM as a scalar.  Result is a lane-dense (1, TB) row.
    y = jnp.sum(h * w4_ref[...], axis=0, keepdims=True) + b4_ref[0, 0]
    o_ref[...] = y[None].astype(o_ref.dtype)                      # (1, 1, TB) unmasked store


@jax.jit
def optimized_nn_forward(x, params):
    """x: (B, INPUT_SIZE) f32; params in PyTorch (out_features, in_features) layout."""
    w1, b1, w2, b2, w3, b3, w4, b4 = params
    B, F = x.shape
    assert F == INPUT_SIZE

    # Batch-tile heuristic (review items 2 + 3):
    #  * B <= 1024: TB = 128 -> small batches collapse to one grid step; mid
    #    batches give >= 2 steps so the "parallel" axis shards across both v7x
    #    TensorCores (v5e/v6e have 1 TC; no downside there).
    #  * B  > 1024: TB = 512 -> 4x fewer grid steps; largest live intermediate
    #    (H1, 512) is ~0.25 MB bf16 / ~0.5 MB f32, far below the scoped-VMEM
    #    limit on every generation, so no vmem_limit_bytes bump is needed.
    TB = 128 if B <= 1024 else 512
    n_tiles = -(-B // TB)
    Bp = n_tiles * TB
    if Bp != B:
        # Only the ragged remainder tile is padded; aligned batches (B % TB == 0)
        # take zero extra HBM passes over x.  Padded columns are independent of
        # real ones and are sliced off below.
        x = jnp.pad(x, ((0, Bp - B), (0, 0)))

    # bf16 weights feed the MXU matmuls (f32 accumulation in-kernel); biases and
    # the tiny fc4 column stay f32 for the VPU/XLU epilogue.
    w1b, w2b, w3b = (w.astype(jnp.bfloat16) for w in (w1, w2, w3))
    w4c = w4.reshape(H3, 1)                                       # (64, 1) column

    rep = lambda i: (0, 0)                                        # replicated block
    out = pl.pallas_call(
        mlp_kernel,
        out_shape=jax.ShapeDtypeStruct((n_tiles, 1, TB), jnp.float32),
        grid_spec=pltpu.PrefetchScalarGridSpec(
            num_scalar_prefetch=0,
            grid=(n_tiles,),
            in_specs=[
                pl.BlockSpec((TB, F), lambda i: (i, 0)),          # x tile, native (B,32) f32
                pl.BlockSpec((H1, F), rep),                       # W1 (bf16)
                pl.BlockSpec((H1, 1), rep),                       # b1 (f32 column)
                pl.BlockSpec((H2, H1), rep),                      # W2
                pl.BlockSpec((H2, 1), rep),                       # b2
                pl.BlockSpec((H3, H2), rep),                      # W3
                pl.BlockSpec((H3, 1), rep),                       # b3
                pl.BlockSpec((H3, 1), rep),                       # W4 column (f32)
                pl.BlockSpec(memory_space=pltpu.MemorySpace.SMEM),  # b4 scalar
            ],
            out_specs=pl.BlockSpec((1, 1, TB), lambda i: (i, 0, 0)),
        ),
        compiler_params=pltpu.CompilerParams(
            dimension_semantics=("parallel",)),                   # v7x: shard tiles over 2 TCs
    )(x, w1b, b1, w2b, b2, w3b, b3, w4c, b4)

    # Lane-dense slab -> PyTorch-shaped (B, 1); pure layout plumbing on 4*Bp bytes.
    return out.reshape(-1)[:B].reshape(B, OUT)


def init_params(key, input_size):
    """nn.Linear-style U(-1/sqrt(fan_in), 1/sqrt(fan_in)) init, PyTorch (out, in) layout."""
    dims = [(input_size, H1), (H1, H2), (H2, H3), (H3, OUT)]
    params = []
    for fan_in, fan_out in dims:
        key, kw, kb = jax.random.split(key, 3)
        bound = 1.0 / jnp.sqrt(float(fan_in))
        w = jax.random.uniform(kw, (fan_out, fan_in), jnp.float32, -bound, bound)
        b = jax.random.uniform(kb, (fan_out, 1), jnp.float32, -bound, bound)
        params += [w, b]
    return tuple(params)


def reference_forward(x, params):
    """Pure-JAX reference using the same bf16-operand / f32-accumulate math."""
    w1, b1, w2, b2, w3, b3, w4, b4 = params
    bf = jnp.bfloat16
    h = jnp.maximum(jnp.dot(x.astype(bf), w1.astype(bf).T,
                            preferred_element_type=jnp.float32) + b1.T, 0.0).astype(bf)
    h = jnp.maximum(jnp.dot(h, w2.astype(bf).T,
                            preferred_element_type=jnp.float32) + b2.T, 0.0).astype(bf)
    h = jnp.maximum(jnp.dot(h, w3.astype(bf).T,
                            preferred_element_type=jnp.float32) + b3.T, 0.0)
    return jnp.sum(h * w4, axis=-1, keepdims=True) + b4.T          # exact f32 epilogue


if __name__ == "__main__":
    key = jax.random.PRNGKey(0)
    key, kx, kx2 = jax.random.split(key, 3)
    params = init_params(key, INPUT_SIZE)

    # Small batch (padded, single-tile path).
    batch = 16
    x = jax.random.normal(kx, (batch, INPUT_SIZE), jnp.float32)
    out = jax.block_until_ready(optimized_nn_forward(x, params))
    ref = reference_forward(x, params)
    assert out.shape == (batch, OUT)
    assert jnp.allclose(out, ref, atol=2e-3, rtol=2e-3), (
        f"max abs err = {jnp.max(jnp.abs(out - ref))}")

    # Multi-tile, pad-free path (B % TB == 0, grid=(4,)).
    batch2 = 512
    x2 = jax.random.normal(kx2, (batch2, INPUT_SIZE), jnp.float32)
    out2 = jax.block_until_ready(optimized_nn_forward(x2, params))
    ref2 = reference_forward(x2, params)
    assert out2.shape == (batch2, OUT)
    assert jnp.allclose(out2, ref2, atol=2e-3, rtol=2e-3), (
        f"max abs err = {jnp.max(jnp.abs(out2 - ref2))}")

    print("KERNEL_OK")
</pallas_src>

<mosaic_0001>
module attributes {stable_mosaic.version = 11 : i64} {
  func.func @mlp_kernel(%arg0: i32, %arg1: memref<128x32xf32, #tpu.memory_space<vmem>>, %arg2: memref<256x32xbf16, #tpu.memory_space<vmem>>, %arg3: memref<256x1xf32, #tpu.memory_space<vmem>>, %arg4: memref<128x256xbf16, #tpu.memory_space<vmem>>, %arg5: memref<128x1xf32, #tpu.memory_space<vmem>>, %arg6: memref<64x128xbf16, #tpu.memory_space<vmem>>, %arg7: memref<64x1xf32, #tpu.memory_space<vmem>>, %arg8: memref<64x1xf32, #tpu.memory_space<vmem>>, %arg9: memref<1x1xf32, #tpu.memory_space<smem>>, %arg10: memref<1x1x128xf32, #tpu.memory_space<vmem>>) attributes {dimension_semantics = [#tpu.dimension_semantics<parallel>], iteration_bounds = array<i64: 1>, scalar_prefetch = 0 : i64, scratch_operands = 0 : i64, tpu.core_type = #tpu.core_type<tc>, window_params = [{transform_indices = @transform_0, window_bounds = array<i64: 128, 32>}, {pipeline_mode = #tpu.pipeline_mode<synchronous>, transform_indices = @transform_1, window_bounds = array<i64: 256, 32>}, {pipeline_mode = #tpu.pipeline_mode<synchronous>, transform_indices = @transform_2, window_bounds = array<i64: 256, 1>}, {pipeline_mode = #tpu.pipeline_mode<synchronous>, transform_indices = @transform_3, window_bounds = array<i64: 128, 256>}, {pipeline_mode = #tpu.pipeline_mode<synchronous>, transform_indices = @transform_4, window_bounds = array<i64: 128, 1>}, {pipeline_mode = #tpu.pipeline_mode<synchronous>, transform_indices = @transform_5, window_bounds = array<i64: 64, 128>}, {pipeline_mode = #tpu.pipeline_mode<synchronous>, transform_indices = @transform_6, window_bounds = array<i64: 64, 1>}, {pipeline_mode = #tpu.pipeline_mode<synchronous>, transform_indices = @transform_7, window_bounds = array<i64: 64, 1>}, {transform_indices = @transform_8, window_bounds = array<i64: 1, 1>}, {transform_indices = @transform_9, window_bounds = array<i64: 1, 1, 128>}]} {
    %c0 = arith.constant 0 : index
    %c0_0 = arith.constant 0 : index
    %0 = vector.load %arg1[%c0, %c0_0] : memref<128x32xf32, #tpu.memory_space<vmem>>, vector<128x32xf32>
    %1 = arith.truncf %0 : vector<128x32xf32> to vector<128x32xbf16>
    %c0_1 = arith.constant 0 : index
    %c0_2 = arith.constant 0 : index
    %2 = vector.load %arg2[%c0_1, %c0_2] : memref<256x32xbf16, #tpu.memory_space<vmem>>, vector<256x32xbf16>
    %cst = arith.constant dense<0.000000e+00> : vector<256x128xf32>
    %3 = tpu.matmul %2, %1, %cst {dimension_numbers = #tpu.dot_dimension_numbers<[1], [1], [0], [0], [0, 0, 1, 0], [], []>} : vector<256x32xbf16>, vector<128x32xbf16>, vector<256x128xf32> -> vector<256x128xf32>
    %c0_3 = arith.constant 0 : index
    %c0_4 = arith.constant 0 : index
    %4 = vector.load %arg3[%c0_3, %c0_4] : memref<256x1xf32, #tpu.memory_space<vmem>>, vector<256x1xf32>
    %5 = vector.broadcast %4 : vector<256x1xf32> to vector<256x128xf32>
    %6 = arith.addf %3, %5 : vector<256x128xf32>
    %cst_5 = arith.constant 0.000000e+00 : f32
    %7 = vector.broadcast %cst_5 : f32 to vector<256x128xf32>
    %8 = arith.maximumf %6, %7 : vector<256x128xf32>
    %9 = arith.truncf %8 : vector<256x128xf32> to vector<256x128xbf16>
    %c0_6 = arith.constant 0 : index
    %c0_7 = arith.constant 0 : index
    %10 = vector.load %arg4[%c0_6, %c0_7] : memref<128x256xbf16, #tpu.memory_space<vmem>>, vector<128x256xbf16>
    %cst_8 = arith.constant dense<0.000000e+00> : vector<128x128xf32>
    %11 = tpu.matmul %10, %9, %cst_8 {dimension_numbers = #tpu.dot_dimension_numbers<[1], [0], [0], [1], [0, 0, 1, 1], [], []>} : vector<128x256xbf16>, vector<256x128xbf16>, vector<128x128xf32> -> vector<128x128xf32>
    %c0_9 = arith.constant 0 : index
    %c0_10 = arith.constant 0 : index
    %12 = vector.load %arg5[%c0_9, %c0_10] : memref<128x1xf32, #tpu.memory_space<vmem>>, vector<128x1xf32>
    %13 = vector.broadcast %12 : vector<128x1xf32> to vector<128x128xf32>
    %14 = arith.addf %11, %13 : vector<128x128xf32>
    %cst_11 = arith.constant 0.000000e+00 : f32
    %15 = vector.broadcast %cst_11 : f32 to vector<128x128xf32>
    %16 = arith.maximumf %14, %15 : vector<128x128xf32>
    %17 = arith.truncf %16 : vector<128x128xf32> to vector<128x128xbf16>
    %c0_12 = arith.constant 0 : index
    %c0_13 = arith.constant 0 : index
    %18 = vector.load %arg6[%c0_12, %c0_13] : memref<64x128xbf16, #tpu.memory_space<vmem>>, vector<64x128xbf16>
    %cst_14 = arith.constant dense<0.000000e+00> : vector<64x128xf32>
    %19 = tpu.matmul %18, %17, %cst_14 {dimension_numbers = #tpu.dot_dimension_numbers<[1], [0], [0], [1], [0, 0, 1, 1], [], []>} : vector<64x128xbf16>, vector<128x128xbf16>, vector<64x128xf32> -> vector<64x128xf32>
    %c0_15 = arith.constant 0 : index
    %c0_16 = arith.constant 0 : index
    %20 = vector.load %arg7[%c0_15, %c0_16] : memref<64x1xf32, #tpu.memory_space<vmem>>, vector<64x1xf32>
    %21 = vector.broadcast %20 : vector<64x1xf32> to vector<64x128xf32>
    %22 = arith.addf %19, %21 : vector<64x128xf32>
    %cst_17 = arith.constant 0.000000e+00 : f32
    %23 = vector.broadcast %cst_17 : f32 to vector<64x128xf32>
    %24 = arith.maximumf %22, %23 : vector<64x128xf32>
    %c0_18 = arith.constant 0 : index
    %c0_19 = arith.constant 0 : index
    %25 = vector.load %arg8[%c0_18, %c0_19] : memref<64x1xf32, #tpu.memory_space<vmem>>, vector<64x1xf32>
    %26 = vector.broadcast %25 : vector<64x1xf32> to vector<64x128xf32>
    %27 = arith.mulf %24, %26 : vector<64x128xf32>
    %cst_20 = arith.constant dense<0.000000e+00> : vector<128xf32>
    %28 = vector.multi_reduction <add>, %27, %cst_20 [0] : vector<64x128xf32> to vector<128xf32>
    %29 = vector.shape_cast %28 : vector<128xf32> to vector<1x128xf32>
    %c0_21 = arith.constant 0 : index
    %c0_22 = arith.constant 0 : index
    %30 = memref.load %arg9[%c0_21, %c0_22] : memref<1x1xf32, #tpu.memory_space<smem>>
    %31 = vector.broadcast %30 : f32 to vector<1x128xf32>
    %32 = arith.addf %29, %31 : vector<1x128xf32>
    %33 = vector.shape_cast %32 : vector<1x128xf32> to vector<1x1x128xf32>
    %c0_23 = arith.constant 0 : index
    %c0_24 = arith.constant 0 : index
    %c0_25 = arith.constant 0 : index
    %34 = vector.load %arg10[%c0_23, %c0_24, %c0_25] : memref<1x1x128xf32, #tpu.memory_space<vmem>>, vector<1x1x128xf32>
    tpu.vector_store %arg10[%c0_23, %c0_24, %c0_25], %33 {strides = array<i32>} : memref<1x1x128xf32, #tpu.memory_space<vmem>>, vector<1x1x128xf32>,
    return
  }
  func.func @transform_0(%arg0: i32) -> (i32, i32) {
    %c0_i32 = arith.constant 0 : i32
    %c0_i32_0 = arith.constant 0 : i32
    return %arg0, %c0_i32 : i32, i32
  }
  func.func @transform_1(%arg0: i32) -> (i32, i32) {
    %c0_i32 = arith.constant 0 : i32
    %c0_i32_0 = arith.constant 0 : i32
    %c0_i32_1 = arith.constant 0 : i32
    return %c0_i32, %c0_i32_0 : i32, i32
  }
  func.func @transform_2(%arg0: i32) -> (i32, i32) {
    %c0_i32 = arith.constant 0 : i32
    %c0_i32_0 = arith.constant 0 : i32
    %c0_i32_1 = arith.constant 0 : i32
    return %c0_i32, %c0_i32_0 : i32, i32
  }
  func.func @transform_3(%arg0: i32) -> (i32, i32) {
    %c0_i32 = arith.constant 0 : i32
    %c0_i32_0 = arith.constant 0 : i32
    %c0_i32_1 = arith.constant 0 : i32
    return %c0_i32, %c0_i32_0 : i32, i32
  }
  func.func @transform_4(%arg0: i32) -> (i32, i32) {
    %c0_i32 = arith.constant 0 : i32
    %c0_i32_0 = arith.constant 0 : i32
    %c0_i32_1 = arith.constant 0 : i32
    return %c0_i32, %c0_i32_0 : i32, i32
  }
  func.func @transform_5(%arg0: i32) -> (i32, i32) {
    %c0_i32 = arith.constant 0 : i32
    %c0_i32_0 = arith.constant 0 : i32
    %c0_i32_1 = arith.constant 0 : i32
    return %c0_i32, %c0_i32_0 : i32, i32
  }
  func.func @transform_6(%arg0: i32) -> (i32, i32) {
    %c0_i32 = arith.constant 0 : i32
    %c0_i32_0 = arith.constant 0 : i32
    %c0_i32_1 = arith.constant 0 : i32
    return %c0_i32, %c0_i32_0 : i32, i32
  }
  func.func @transform_7(%arg0: i32) -> (i32, i32) {
    %c0_i32 = arith.constant 0 : i32
    %c0_i32_0 = arith.constant 0 : i32
    %c0_i32_1 = arith.constant 0 : i32
    return %c0_i32, %c0_i32_0 : i32, i32
  }
  func.func @transform_8(%arg0: i32) -> (i32, i32) {
    %c0_i32 = arith.constant 0 : i32
    %c0_i32_0 = arith.constant 0 : i32
    %c0_i32_1 = arith.constant 0 : i32
    return %c0_i32, %c0_i32_0 : i32, i32
  }
  func.func @transform_9(%arg0: i32) -> (i32, i32, i32) {
    %c0_i32 = arith.constant 0 : i32
    %c0_i32_0 = arith.constant 0 : i32
    %c0_i32_1 = arith.constant 0 : i32
    return %arg0, %c0_i32, %c0_i32_0 : i32, i32, i32
  }
}

</mosaic_0001>

<bundles_post_ra>
// kernel: optimized_nn_forward.1
= control target key start
LH: loop header
LB: loop body
LE: loop exit
PB: predicated region body
PF: predicated region fallthrough
CT: control target
= control target key end

     0   :  { %v1295_v0 = vmov 0   ;;  %vm361_vm0 = vcmask 261120   ;;  %s1889_s2 = inlined_call_operand.vmem [shape: f32[256,1], index: 2, kind: input, shape index: {}]   ;;  %s1890_s0 = inlined_call_operand.vmem [shape: f32[128,32], index: 0, kind: input, shape index: {}]   ;;  %s1891_s1 = inlined_call_operand.vmem [shape: bf16[256,32], index: 1, kind: input, shape index: {}]   ;;  %s1892_s4 = inlined_call_operand.vmem [shape: f32[128,1], index: 4, kind: input, shape index: {}]   ;;  %s1893_s6 = inlined_call_operand.vmem [shape: f32[64,1], index: 6, kind: input, shape index: {}]   ;;  %s1894_s7 = inlined_call_operand.vmem [shape: f32[64,1], index: 7, kind: input, shape index: {}]   ;;  %s1895_s3 = inlined_call_operand.vmem [shape: bf16[128,256], index: 3, kind: input, shape index: {}]   ;;  %s1896_s5 = inlined_call_operand.vmem [shape: bf16[64,128], index: 5, kind: input, shape index: {}]   ;;  %s1897_s8 = inlined_call_operand.<no memory space> [shape: f32[1,1], index: 8, kind: input, shape index: {}]   ;;  %s1898_s9 = inlined_call_operand.vmem [shape: f32[1,1,128], index: 9, kind: output, shape index: {}]  }
   0x1   :  { %1293 = vset.pattern.permute.xlu1 %v1295_v0  ;;  %1292 = vset.pattern.permute.xlu0 %v1295_v0  ;;  %v119_v1 = vld [vmem:[%s1889_s2 + $0xf0] sm:$0xff]  ;;  %v48_v4 = vld [vmem:[%s1890_s0 + $0x78] sm:$0xff]  ;;  %v45_v6 = vld [vmem:[%s1890_s0 + $0x60] sm:$0xff] }
   0x2   :  { %v103_v2 = vld [vmem:[%s1889_s2 + $0x70] sm:$0xff]  ;;  %273 = vperm.xlu0 %1292, %v119_v1   ;;  %1294 = vset.pattern.permute.xlu2 %v1295_v0  ;;  %v46_v7 = vld [vmem:[%s1890_s0 + $0x68] sm:$0xff]  ;;  %v117_v9 = vld [vmem:[%s1889_s2 + $0xe0] sm:$0xff] }
   0x3   :  { %v47_v3 = vld [vmem:[%s1890_s0 + $0x70] sm:$0xff]  ;;  %193 = vperm.xlu1 %1293, %v103_v2   ;;  %v120_v10 = vld [vmem:[%s1889_s2 + $0xf8] sm:$0xff]  ;;  %v55_v12 = vpack.c.bf16 %v46_v7, %v45_v6  ;;  %263 = vperm.xlu2 %1294, %v117_v9   ;;  %v118_v16 = vld [vmem:[%s1889_s2 + $0xe8] sm:$0xff] }
   0x4   :  { %v56_v5 = vpack.c.bf16 %v48_v4, %v47_v3  ;;  %v104_v11 = vld [vmem:[%s1889_s2 + $0x78] sm:$0xff]  ;;  %v43_v14 = vld [vmem:[%s1890_s0 + $0x50] sm:$0xff]  ;;  %v102_v17 = vld [vmem:[%s1889_s2 + $0x68] sm:$0xff] }
   0x5   :  { %v429_v13 = vsel %vm361_vm0, %v55_v12, 0  ;;  %v44_v15 = vld [vmem:[%s1890_s0 + $0x58] sm:$0xff]  ;;  %v101_v18 = vld [vmem:[%s1889_s2 + $0x60] sm:$0xff]  ;;  %v42_v22 = vld [vmem:[%s1890_s0 + $0x48] sm:$0xff] }
   0x6   :  { %v432_v8 = vsel %vm361_vm0, %v56_v5, 0  ;;  %v54_v19 = vpack.c.bf16 %v44_v15, %v43_v14  ;;  %v41_v21 = vld [vmem:[%s1890_s0 + $0x40] sm:$0xff]  ;;  %v115_v23 = vld [vmem:[%s1889_s2 + $0xd0] sm:$0xff]  ;;  %v116_v24 = vld [vmem:[%s1889_s2 + $0xd8] sm:$0xff] }
   0x7   :  { %434 = vmatpush.bf16.xpose.msra.mxu0 %v432_v8  ;;  %1275 = vmatpush.bf16.xpose.msra.mxu3 %v432_v8  ;;  %v99_v25 = vld [vmem:[%s1889_s2 + $0x50] sm:$0xff]  ;;  %v53_v26 = vpack.c.bf16 %v42_v22, %v41_v21  ;;  %v40_v29 = vld [vmem:[%s1890_s0 + $0x38] sm:$0xff]  ;;  %v113_v31 = vld [vmem:[%s1889_s2 + $0xc0] sm:$0xff] }
   0x8   :  { %v426_v20 = vsel %vm361_vm0, %v54_v19, 0  ;;  %v39_v28 = vld [vmem:[%s1890_s0 + $0x30] sm:$0xff]  ;;  %v100_v30 = vld [vmem:[%s1889_s2 + $0x58] sm:$0xff]  ;;  %v114_v32 = vld [vmem:[%s1889_s2 + $0xc8] sm:$0xff] }
   0x9   :  { %v423_v27 = vsel %vm361_vm0, %v53_v26, 0  ;;  %v52_v33 = vpack.c.bf16 %v40_v29, %v39_v28  ;;  %v37_v35 = vld [vmem:[%s1890_s0 + $0x20] sm:$0xff]  ;;  %v38_v36 = vld [vmem:[%s1890_s0 + $0x28] sm:$0xff]  ;;  %v111_v38 = vld [vmem:[%s1889_s2 + $0xb0] sm:$0xff] }
   0xa   :  { %278 = vperm.xlu0 %1292, %v120_v10   ;;  %v97_v37 = vld [vmem:[%s1889_s2 + $0x40] sm:$0xff]  ;;  %v98_v39 = vld [vmem:[%s1889_s2 + $0x48] sm:$0xff]  ;;  %v51_v40 = vpack.c.bf16 %v38_v36, %v37_v35  ;;  %v35_v42 = vld [vmem:[%s1890_s0 + $0x10] sm:$0xff] }
   0xb   :  { %198 = vperm.xlu1 %1293, %v104_v11   ;;  %268 = vperm.xlu2 %1294, %v118_v16   ;;  %v420_v34 = vsel %vm361_vm0, %v52_v33, 0  ;;  %v36_v43 = vld [vmem:[%s1890_s0 + $0x18] sm:$0xff]  ;;  %v95_v46 = vld [vmem:[%s1889_s2 + $0x30] sm:$0xff]  ;;  %v33_v49 = vld [vmem:[%s1890_s0] sm:$0xff] }
   0xc   :  { %v417_v41 = vsel %vm361_vm0, %v51_v40, 0  ;;  %v112_v44 = vld [vmem:[%s1889_s2 + $0xb8] sm:$0xff]  ;;  %v50_v47 = vpack.c.bf16 %v36_v43, %v35_v42  ;;  %v34_v50 = vld [vmem:[%s1890_s0 + $0x8] sm:$0xff]  ;;  %v109_v51 = vld [vmem:[%s1889_s2 + $0xa0] sm:$0xff] }
   0xd   :  { %v96_v45 = vld [vmem:[%s1889_s2 + $0x38] sm:$0xff]  ;;  %v110_v52 = vld [vmem:[%s1889_s2 + $0xa8] sm:$0xff]  ;;  %v93_v53 = vld [vmem:[%s1889_s2 + $0x20] sm:$0xff]  ;;  %v49_v54 = vpack.c.bf16 %v34_v50, %v33_v49 }
   0xe   :  { %v414_v48 = vsel %vm361_vm0, %v50_v47, 0  ;;  %v94_v56 = vld [vmem:[%s1889_s2 + $0x28] sm:$0xff]  ;;  %v107_v57 = vld [vmem:[%s1889_s2 + $0x90] sm:$0xff]  ;;  %v108_v58 = vld [vmem:[%s1889_s2 + $0x98] sm:$0xff] }
   0xf   :  { %435 = vmatpush.bf16.xpose.msra.mxu0 %v429_v13  ;;  %1276 = vmatpush.bf16.xpose.msra.mxu3 %v429_v13  ;;  %v411_v55 = vsel %vm361_vm0, %v49_v54, 0  ;;  %v1239_v59 = vld [vmem:[%s1891_s1] sm:$0xff]  ;;  %v91_v61 = vld [vmem:[%s1889_s2 + $0x10] sm:$0xff]  ;;  %v92_v63 = vld [vmem:[%s1889_s2 + $0x18] sm:$0xff] }
  0x10   :  { %v1247_v60 = vld [vmem:[%s1891_s1 + $0x40] sm:$0xff]  ;;  %v106_v0 = vld [vmem:[%s1889_s2 + $0x88] sm:$0xff]  ;;  %v601_v5 = vld [vmem:[%s1892_s4 + $0x70] sm:$0xff] }
  0x11   :  { %v105_v62 = vld [vmem:[%s1889_s2 + $0x80] sm:$0xff]  ;;  %v90_v1 = vld [vmem:[%s1889_s2 + $0x8] sm:$0xff]  ;;  %v602_v7 = vld [vmem:[%s1892_s4 + $0x78] sm:$0xff] }
  0x12   :  { %183 = vperm.xlu0 %1292, %v101_v18   ;;  %v89_v2 = vld [vmem:[%s1889_s2] sm:$0xff]  ;;  %v1240_v3 = vld [vmem:[%s1891_s1 + $0x8] sm:$0xff]  ;;  %v598_v9 = vld [vmem:[%s1892_s4 + $0x58] sm:$0xff] }
  0x13   :  { %188 = vperm.xlu1 %1293, %v102_v17   ;;  %253 = vperm.xlu2 %1294, %v115_v23   ;;  %v1248_v4 = vld [vmem:[%s1891_s1 + $0x48] sm:$0xff]  ;;  %v599_v6 = vld [vmem:[%s1892_s4 + $0x60] sm:$0xff]  ;;  %v597_v10 = vld [vmem:[%s1892_s4 + $0x50] sm:$0xff] }
  0x14   :  { %v600_v8 = vld [vmem:[%s1892_s4 + $0x68] sm:$0xff]  ;;  %v1241_v11 = vld [vmem:[%s1891_s1 + $0x10] sm:$0xff]  ;;  %v595_v13 = vld [vmem:[%s1892_s4 + $0x40] sm:$0xff] }
  0x15   :  { %v1249_v12 = vld [vmem:[%s1891_s1 + $0x50] sm:$0xff]  ;;  %v596_v15 = vld [vmem:[%s1892_s4 + $0x48] sm:$0xff]  ;;  %v594_v16 = vld [vmem:[%s1892_s4 + $0x38] sm:$0xff] }
  0x16   :  { %v593_v14 = vld [vmem:[%s1892_s4 + $0x30] sm:$0xff]  ;;  %v592_v17 = vld [vmem:[%s1892_s4 + $0x28] sm:$0xff]  ;;  %v591_v18 = vld [vmem:[%s1892_s4 + $0x20] sm:$0xff] }
  0x17   :  { %436 = vmatpush.bf16.xpose.msra.mxu0 %v426_v20  ;;  %1277 = vmatpush.bf16.xpose.msra.mxu3 %v426_v20  ;;  %v1242_v19 = vld [vmem:[%s1891_s1 + $0x18] sm:$0xff]  ;;  %v589_v23 = vld [vmem:[%s1892_s4 + $0x10] sm:$0xff]  ;;  %v588_v29 = vld [vmem:[%s1892_s4 + $0x8] sm:$0xff] }
  0x18   :  { %v1250_v20 = vld [vmem:[%s1891_s1 + $0x58] sm:$0xff]  ;;  %v1243_v33 = vld [vmem:[%s1891_s1 + $0x20] sm:$0xff]  ;;  %v1252_v47 = vld [vmem:[%s1891_s1 + $0x68] sm:$0xff] }
  0x19   :  { %v590_v26 = vld [vmem:[%s1892_s4 + $0x18] sm:$0xff]  ;;  %v1002_v43 = vld [vmem:[%s1894_s7] sm:$0xff] }
  0x1a   :  { %258 = vperm.xlu0 %1292, %v116_v24  }
  0x1b   :  { %173 = vperm.xlu1 %1293, %v99_v25   ;;  %178 = vperm.xlu2 %1294, %v100_v30   ;;  %v587_v25 = vld [vmem:[%s1892_s4] sm:$0xff] }
  0x1f   :  { %437 = vmatpush.bf16.xpose.msra.mxu0 %v423_v27  ;;  %1278 = vmatpush.bf16.xpose.msra.mxu3 %v423_v27 }
  0x22   :  { %243 = vperm.xlu0 %1292, %v113_v31   ;;  %v894_v31 = vld [vmem:[%s1893_s6 + $0x8] sm:$0xff] }
  0x23   :  { %248 = vperm.xlu1 %1293, %v114_v32   ;;  %163 = vperm.xlu2 %1294, %v97_v37   ;;  %v893_v32 = vld [vmem:[%s1893_s6] sm:$0xff]  ;;  %v895_v37 = vld [vmem:[%s1893_s6 + $0x10] sm:$0xff] }
  0x27   :  { %438 = vmatpush.bf16.xpose.msra.mxu0 %v420_v34  ;;  %1279 = vmatpush.bf16.xpose.msra.mxu3 %v420_v34  ;;  %v1251_v34 = vld [vmem:[%s1891_s1 + $0x60] sm:$0xff] }
  0x2a   :  { %168 = vperm.xlu0 %1292, %v98_v39   ;;  %v896_v39 = vld [vmem:[%s1893_s6 + $0x18] sm:$0xff] }
  0x2b   :  { %233 = vperm.xlu1 %1293, %v111_v38   ;;  %238 = vperm.xlu2 %1294, %v112_v44   ;;  %v897_v38 = vld [vmem:[%s1893_s6 + $0x20] sm:$0xff]  ;;  %v1004_v44 = vld [vmem:[%s1894_s7 + $0x10] sm:$0xff] }
  0x2f   :  { %439 = vmatpush.bf16.xpose.msra.mxu0 %v417_v41  ;;  %1280 = vmatpush.bf16.xpose.msra.mxu3 %v417_v41 }
  0x32   :  { %153 = vperm.xlu0 %1292, %v95_v46   ;;  %v1244_v46 = vld [vmem:[%s1891_s1 + $0x28] sm:$0xff] }
  0x33   :  { %158 = vperm.xlu1 %1293, %v96_v45   ;;  %223 = vperm.xlu2 %1294, %v109_v51   ;;  %v1003_v45 = vld [vmem:[%s1894_s7 + $0x8] sm:$0xff] }
  0x34   :  { %v898_v51 = vld [vmem:[%s1893_s6 + $0x28] sm:$0xff] }
  0x37   :  { %440 = vmatpush.bf16.xpose.msra.mxu0 %v414_v48  ;;  %1281 = vmatpush.bf16.xpose.msra.mxu3 %v414_v48 }
  0x3a   :  { %228 = vperm.xlu0 %1292, %v110_v52   ;;  %v899_v52 = vld [vmem:[%s1893_s6 + $0x30] sm:$0xff] }
  0x3b   :  { %143 = vperm.xlu1 %1293, %v93_v53   ;;  %148 = vperm.xlu2 %1294, %v94_v56   ;;  %v1005_v53 = vld [vmem:[%s1894_s7 + $0x18] sm:$0xff]  ;;  %v1006_v56 = vld [vmem:[%s1894_s7 + $0x20] sm:$0xff] }
  0x3f   :  { %441 = vmatpush.bf16.xpose.msra.mxu0 %v411_v55  ;;  %1282 = vmatpush.bf16.xpose.msra.mxu3 %v411_v55 }
  0x42   :  { %213 = vperm.xlu0 %1292, %v107_v57  }
  0x43   :  { %218 = vperm.xlu1 %1293, %v108_v58   ;;  %133 = vperm.xlu2 %1294, %v91_v61   ;;  %v1007_v58 = vld [vmem:[%s1894_s7 + $0x28] sm:$0xff]  ;;  %v1253_v61 = vld [vmem:[%s1891_s1 + $0x70] sm:$0xff] }
  0x46   :  { %1143 = vmatmul.msk.bf16.vlgmr.msra.gmra.mxu0 %vm361_vm0, %v1239_v59  ;;  %1151 = vmatmul.msk.bf16.vlgmr.msra.gmra.mxu3 %vm361_vm0, %v1247_v60  ;;  %v900_v59 = vld [vmem:[%s1893_s6 + $0x38] sm:$0xff]  ;;  %v1245_v60 = vld [vmem:[%s1891_s1 + $0x30] sm:$0xff] }
  0x4a   :  { %138 = vperm.xlu0 %1292, %v92_v63  }
  0x4b   :  { %203 = vperm.xlu1 %1293, %v105_v62   ;;  %208 = vperm.xlu2 %1294, %v106_v0   ;;  %v1008_v0 = vld [vmem:[%s1894_s7 + $0x30] sm:$0xff] }
  0x52   :  { %123 = vperm.xlu0 %1292, %v89_v2  }
  0x53   :  { %128 = vperm.xlu1 %1293, %v90_v1   ;;  %675 = vperm.xlu2 %1294, %v601_v5   ;;  %v1009_v1 = vld [vmem:[%s1894_s7 + $0x38] sm:$0xff] }
  0x54   :  { %v1246_v5 = vld [vmem:[%s1891_s1 + $0x38] sm:$0xff] }
  0x56   :  { %1144 = vmatmul.msk.bf16.gmra.mxu0 %vm361_vm0, %v1240_v3  ;;  %1152 = vmatmul.msk.bf16.gmra.mxu3 %vm361_vm0, %v1248_v4 }
  0x5a   :  { %680 = vperm.xlu0 %1292, %v602_v7  }
  0x5b   :  { %665 = vperm.xlu1 %1293, %v599_v6   ;;  %670 = vperm.xlu2 %1294, %v600_v8   ;;  %v1254_v6 = vld [vmem:[%s1891_s1 + $0x78] sm:$0xff] }
  0x5d   :  { %v1571_v24 = vpop.permute.xlu2 %263 }
  0x62   :  { %655 = vperm.xlu0 %1292, %v597_v10  }
  0x63   :  { %660 = vperm.xlu1 %1293, %v598_v9   ;;  %645 = vperm.xlu2 %1294, %v595_v13  }
  0x65   :  { %v1588_v30 = vpop.permute.xlu2 %268 }
  0x66   :  { %1145 = vmatmul.msk.bf16.gmra.mxu0 %vm361_vm0, %v1241_v11  ;;  %1153 = vmatmul.msk.bf16.gmra.mxu3 %vm361_vm0, %v1249_v12 }
  0x6a   :  { %650 = vperm.xlu0 %1292, %v596_v15  }
  0x6b   :  { %635 = vperm.xlu1 %1293, %v593_v14   ;;  %640 = vperm.xlu2 %1294, %v594_v16  }
  0x6d   :  { %v1617_v40 = vpop.permute.xlu2 %253 }
  0x72   :  { %625 = vperm.xlu0 %1292, %v591_v18  }
  0x73   :  { %630 = vperm.xlu1 %1293, %v592_v17   ;;  %615 = vperm.xlu2 %1294, %v589_v23  }
  0x74   :  { %v1564_v21 = vpop.permute.xlu0 %273 }
  0x75   :  { %v1566_v22 = vpop.permute.xlu1 %193  ;;  %v1638_v48 = vpop.permute.xlu2 %178 }
  0x76   :  { %1146 = vmatmul.msk.bf16.gmra.mxu0 %vm361_vm0, %v1242_v19  ;;  %1154 = vmatmul.msk.bf16.gmra.mxu3 %vm361_vm0, %v1250_v20 }
  0x7a   :  { %620 = vperm.xlu0 %1292, %v590_v26  }
  0x7b   :  { %605 = vperm.xlu1 %1293, %v587_v25   ;;  %610 = vperm.xlu2 %1294, %v588_v29  }
  0x7c   :  { %v1581_v27 = vpop.permute.xlu0 %278 }
  0x7d   :  { %v1583_v28 = vpop.permute.xlu1 %198  ;;  %v1662_v57 = vpop.permute.xlu2 %163 }
  0x82   :  { %903 = vperm.xlu0 %1292, %v893_v32  }
  0x83   :  { %908 = vperm.xlu1 %1293, %v894_v31   ;;  %913 = vperm.xlu2 %1294, %v895_v37  }
  0x84   :  { %v1604_v36 = vpop.permute.xlu0 %183 }
  0x85   :  { %v1602_v35 = vpop.permute.xlu1 %188  ;;  %v1688_v2 = vpop.permute.xlu2 %238 }
  0x86   :  { %1147 = vmatmul.msk.bf16.gmra.mxu0 %vm361_vm0, %v1243_v33  ;;  %1155 = vmatmul.msk.bf16.gmra.mxu3 %vm361_vm0, %v1251_v34 }
  0x8a   :  { %918 = vperm.xlu0 %1292, %v896_v39  }
  0x8b   :  { %923 = vperm.xlu1 %1293, %v897_v38   ;;  %1012 = vperm.xlu2 %1294, %v1002_v43  }
  0x8c   :  { %v1619_v41 = vpop.permute.xlu0 %258 }
  0x8d   :  { %v1621_v42 = vpop.permute.xlu1 %173  ;;  %v224_v7 = vpop.permute.xlu2 %223 }
  0x92   :  { %1017 = vperm.xlu0 %1292, %v1003_v45  }
  0x93   :  { %1022 = vperm.xlu1 %1293, %v1004_v44   ;;  %928 = vperm.xlu2 %1294, %v898_v51  }
  0x94   :  { %v1640_v49 = vpop.permute.xlu0 %243 }
  0x95   :  { %v1642_v50 = vpop.permute.xlu1 %248  ;;  %v149_v10 = vpop.permute.xlu2 %148 }
  0x96   :  { %1148 = vmatmul.msk.bf16.gmra.mxu0 %vm361_vm0, %v1244_v46  ;;  %1156 = vmatmul.msk.bf16.gmra.mxu3 %vm361_vm0, %v1252_v47 }
  0x9a   :  { %1027 = vperm.xlu0 %1292, %v1005_v53  }
  0x9b   :  { %933 = vperm.xlu1 %1293, %v899_v52   ;;  %1032 = vperm.xlu2 %1294, %v1006_v56  }
  0x9c   :  { %v1657_v55 = vpop.permute.xlu0 %168 }
  0x9d   :  { %v1655_v54 = vpop.permute.xlu1 %233  ;;  %v134_v14 = vpop.permute.xlu2 %133 }
  0xa2   :  { %938 = vperm.xlu0 %1292, %v900_v59  }
  0xa3   :  { %1037 = vperm.xlu1 %1293, %v1007_v58   ;;  %1042 = vperm.xlu2 %1294, %v1008_v0  }
  0xa4   :  { %v1678_v63 = vpop.permute.xlu0 %153 }
  0xa5   :  { %v1676_v62 = vpop.permute.xlu1 %158  ;;  %v209_v31 = vpop.permute.xlu2 %208 }
  0xa6   :  { %1149 = vmatmul.msk.bf16.gmra.mxu0 %vm361_vm0, %v1245_v60  ;;  %1157 = vmatmul.msk.bf16.gmra.mxu3 %vm361_vm0, %v1253_v61 }
  0xaa   :  { %1047 = vperm.xlu0 %1292, %v1009_v1  }
  0xac   :  { %v229_v3 = vpop.permute.xlu0 %228 }
  0xad   :  { %v144_v4 = vpop.permute.xlu1 %143 }
  0xb4   :  { %v214_v8 = vpop.permute.xlu0 %213 }
  0xb5   :  { %v219_v9 = vpop.permute.xlu1 %218 }
  0xb6   :  { %1150 = vmatmul.msk.bf16.gmra.mxu0 %vm361_vm0, %v1246_v5  ;;  %1158 = vmatmul.msk.bf16.gmra.mxu3 %vm361_vm0, %v1254_v6 }
  0xbc   :  { %v139_v11 = vpop.permute.xlu0 %138 }
  0xbd   :  { %v204_v12 = vpop.permute.xlu1 %203 }
  0xc3   :  { %v443_v13 = vpop.f32.mrf.mxu0 }
  0xc4   :  { %v124_v15 = vpop.permute.xlu0 %123 }
  0xc5   :  { %v444_v16 = vadd.f32 %v443_v13, %v124_v15  ;;  %v129_v18 = vpop.permute.xlu1 %128 }
  0xc7   :  { %v523_v20 = vmax.f32 %v444_v16, 0.0 }
  0xc9   :  { %v483_v17 = vpop.f32.mrf.mxu3 }
  0xca   :  { %v484_v26 = vadd.f32 %v483_v17, %v204_v12 }
  0xcb   :  { %v445_v19 = vpop.f32.mrf.mxu0 }
  0xcc   :  { %v446_v23 = vadd.f32 %v445_v19, %v129_v18  ;;  %v539_v37 = vmax.f32 %v484_v26, 0.0 }
  0xce   :  { %v524_v25 = vmax.f32 %v446_v23, 0.0 }
  0xd0   :  { %v1698_v29 = vpack.c.bf16 %v524_v25, %v523_v20 }
  0xd1   :  { %v485_v32 = vpop.f32.mrf.mxu3 }
  0xd2   :  { %v486_v33 = vadd.f32 %v485_v32, %v209_v31 }
  0xd3   :  { %v448_v34 = vpop.f32.mrf.mxu0 }
  0xd4   :  { %v540_v38 = vmax.f32 %v486_v33, 0.0  ;;  %v449_v43 = vadd.f32 %v448_v34, %v134_v14 }
  0xd6   :  { %v1700_v39 = vpack.c.bf16 %v540_v38, %v539_v37  ;;  %v525_v46 = vmax.f32 %v449_v43, 0.0 }
  0xd9   :  { %v488_v44 = vpop.f32.mrf.mxu3 }
  0xda   :  { %v489_v52 = vadd.f32 %v488_v44, %v214_v8 }
  0xdb   :  { %v450_v45 = vpop.f32.mrf.mxu0 }
  0xdc   :  { %v451_v47 = vadd.f32 %v450_v45, %v139_v11  ;;  %v541_v60 = vmax.f32 %v489_v52, 0.0 }
  0xde   :  { %v526_v51 = vmax.f32 %v451_v47, 0.0 }
  0xe0   :  { %v1702_v53 = vpack.c.bf16 %v526_v51, %v525_v46 }
  0xe1   :  { %v490_v56 = vpop.f32.mrf.mxu3 }
  0xe2   :  { %v491_v58 = vadd.f32 %v490_v56, %v219_v9 }
  0xe3   :  { %v453_v59 = vpop.f32.mrf.mxu0 }
  0xe4   :  { %v542_v61 = vmax.f32 %v491_v58, 0.0  ;;  %v454_v1 = vadd.f32 %v453_v59, %v144_v4 }
  0xe6   :  { %v1704_v0 = vpack.c.bf16 %v542_v61, %v541_v60  ;;  %v527_v12 = vmax.f32 %v454_v1, 0.0 }
  0xe9   :  { %v493_v5 = vpop.f32.mrf.mxu3 }
  0xea   :  { %v494_v15 = vadd.f32 %v493_v5, %v224_v7 }
  0xeb   :  { %v455_v6 = vpop.f32.mrf.mxu0 }
  0xec   :  { %v456_v13 = vadd.f32 %v455_v6, %v149_v10  ;;  %v543_v18 = vmax.f32 %v494_v15, 0.0 }
  0xee   :  { %v528_v14 = vmax.f32 %v456_v13, 0.0 }
  0xf0   :  { %v1706_v16 = vpack.c.bf16 %v528_v14, %v527_v12 }
  0xf1   :  { %v495_v11 = vpop.f32.mrf.mxu3 }
  0xf2   :  { %v496_v8 = vadd.f32 %v495_v11, %v229_v3 }
  0xf3   :  { %v458_v17 = vpop.f32.mrf.mxu0 }
  0xf4   :  { %v544_v19 = vmax.f32 %v496_v8, 0.0  ;;  %v459_v20 = vadd.f32 %v458_v17, %v1678_v63 }
  0xf6   :  { %v1708_v9 = vpack.c.bf16 %v544_v19, %v543_v18  ;;  %v529_v4 = vmax.f32 %v459_v20, 0.0 }
  0xf9   :  { %v498_v23 = vpop.f32.mrf.mxu3 }
  0xfa   :  { %v499_v10 = vadd.f32 %v498_v23, %v1655_v54 }
  0xfb   :  { %v460_v25 = vpop.f32.mrf.mxu0 }
  0xfc   :  { %v461_v26 = vadd.f32 %v460_v25, %v1676_v62  ;;  %v545_v34 = vmax.f32 %v499_v10, 0.0 }
  0xfe   :  { %v530_v31 = vmax.f32 %v461_v26, 0.0 }
 0x100   :  { %v1713_v7 = vpack.c.bf16 %v530_v31, %v529_v4 }
 0x101   :  { %v500_v32 = vpop.f32.mrf.mxu3 }
 0x102   :  { %v501_v3 = vadd.f32 %v500_v32, %v1688_v2 }
 0x103   :  { %v463_v33 = vpop.f32.mrf.mxu0 }
 0x104   :  { %v546_v37 = vmax.f32 %v501_v3, 0.0 }
 0x106   :  { %v1716_v38 = vpack.c.bf16 %v546_v37, %v545_v34 }
 0x109   :  { %v503_v43 = vpop.f32.mrf.mxu3 }
 0x10a   :  { %v504_v3 = vadd.f32 %v503_v43, %v1640_v49  ;;  %v1161_v49 = vld [vmem:[%s1895_s3] sm:$0xf] }
 0x10b   :  { %v465_v63 = vpop.f32.mrf.mxu0 }
 0x111   :  { %v505_v44 = vpop.f32.mrf.mxu3 }
 0x113   :  { %v468_v45 = vpop.f32.mrf.mxu0 }
 0x114   :  { %v469_v17 = vadd.f32 %v468_v45, %v1621_v42  ;;  %v1177_v45 = vld [vmem:[%s1895_s3 + $0x20] sm:$0xf] }
 0x116   :  { %v533_v25 = vmax.f32 %v469_v17, 0.0  ;;  %v1203_v17 = vld [vmem:[%s1895_s3 + $0x58] sm:$0xf0] }
 0x119   :  { %v508_v46 = vpop.f32.mrf.mxu3 }
 0x11b   :  { %v470_v47 = vpop.f32.mrf.mxu0 }
 0x11c   :  { %v471_v13 = vadd.f32 %v470_v47, %v1638_v48 }
 0x11e   :  { %v534_v19 = vmax.f32 %v471_v13, 0.0 }
 0x121   :  { %v510_v62 = vpop.f32.mrf.mxu3 }
 0x122   :  { %v511_v4 = vadd.f32 %v510_v62, %v1619_v41  ;;  %v1259_v62 = vld [vmem:[%s1895_s3 + $0x24] sm:$0xf] }
 0x123   :  { %v473_v51 = vpop.f32.mrf.mxu0 }
 0x124   :  { %v474_v5 = vadd.f32 %v473_v51, %v1604_v36  ;;  %v466_v36 = vadd.f32 %v465_v63, %v1657_v55  ;;  %v506_v55 = vadd.f32 %v505_v44, %v1642_v50  ;;  %v550_v32 = vmax.f32 %v511_v4, 0.0  ;;  %v1256_v50 = vld [vmem:[%s1895_s3 + $0x4] sm:$0xf0]  ;;  %v1171_v44 = vld [vmem:[%s1895_s3 + $0x18] sm:$0xf0] }
 0x125   :  { %v547_v63 = vmax.f32 %v504_v3, 0.0  ;;  %v1162_v43 = vor.u32 %v1256_v50, %v1161_v49  ;;  %v1179_v51 = vld [vmem:[%s1895_s3 + $0x28] sm:$0xf0]  ;;  %v1217_v4 = vld [vmem:[%s1895_s3 + $0x70] sm:$0xf] }
 0x126   :  { %v535_v18 = vmax.f32 %v474_v5, 0.0  ;;  %v532_v31 = vmax.f32 %v466_v36, 0.0  ;;  %v548_v34 = vmax.f32 %v506_v55, 0.0  ;;  %v1820_v36 = vpop.permute.xlu2 %675  ;;  %v1846_v55 = vpop.permute.xlu0 %680 }
 0x129   :  { %v513_v52 = vpop.f32.mrf.mxu3 }
 0x12a   :  { %v514_v48 = vadd.f32 %v513_v52, %v1571_v24  ;;  %v1182_v52 = vor.u32 %v1259_v62, %v1179_v51 }
 0x12b   :  { %v475_v54 = vpop.f32.mrf.mxu0 }
 0x12c   :  { %v476_v61 = vadd.f32 %v475_v54, %v1602_v35  ;;  %v551_v10 = vmax.f32 %v514_v48, 0.0  ;;  %v1185_v54 = vld [vmem:[%s1895_s3 + $0x30] sm:$0xf]  ;;  %v1267_v48 = vld [vmem:[%s1895_s3 + $0x64] sm:$0xf] }
 0x12e   :  { %v536_v14 = vmax.f32 %v476_v61, 0.0  ;;  %v1193_v61 = vld [vmem:[%s1895_s3 + $0x40] sm:$0xf] }
 0x131   :  { %v515_v56 = vpop.f32.mrf.mxu3 }
 0x133   :  { %v478_v58 = vpop.f32.mrf.mxu0 }
 0x134   :  { %v479_v2 = vadd.f32 %v478_v58, %v1566_v22  ;;  %v516_v22 = vadd.f32 %v515_v56, %v1588_v30  ;;  %v1262_v56 = vld [vmem:[%s1895_s3 + $0x34] sm:$0xf0] }
 0x135   :  { %v1186_v58 = vor.u32 %v1262_v56, %v1185_v54 }
 0x136   :  { %v537_v6 = vmax.f32 %v479_v2, 0.0  ;;  %v552_v42 = vmax.f32 %v516_v22, 0.0  ;;  %v1187_v2 = vld [vmem:[%s1895_s3 + $0x38] sm:$0xf0]  ;;  %v1209_v22 = vld [vmem:[%s1895_s3 + $0x60] sm:$0xf] }
 0x138   :  { %v569_v24 = vpack.c.bf16 %v552_v42, %v551_v10  ;;  %v1270_v42 = vld [vmem:[%s1895_s3 + $0x74] sm:$0xf0] }
 0x139   :  { %v518_v59 = vpop.f32.mrf.mxu3 }
 0x13a   :  { %v519_v15 = vadd.f32 %v518_v59, %v1564_v21  ;;  %v561_v21 = vpack.c.bf16 %v536_v14, %v535_v18  ;;  %v1261_v59 = vld [vmem:[%s1895_s3 + $0x34] sm:$0xf]  ;;  %v1201_v14 = vld [vmem:[%s1895_s3 + $0x50] sm:$0xf] }
 0x13b   :  { %v480_v60 = vpop.f32.mrf.mxu0 }
 0x13c   :  { %v481_v1 = vadd.f32 %v480_v60, %v1583_v28  ;;  %v464_v28 = vadd.f32 %v463_v33, %v1662_v57  ;;  %v553_v20 = vmax.f32 %v519_v15, 0.0  ;;  %v560_v57 = vpack.c.bf16 %v534_v19, %v533_v25  ;;  %v1266_v15 = vld [vmem:[%s1895_s3 + $0x54] sm:$0xf0]  ;;  %v1822_v19 = vpop.permute.xlu1 %665 }
 0x13d   :  { %v1190_v60 = vor.u32 %v1261_v59, %v1187_v2 }
 0x13e   :  { %v538_v12 = vmax.f32 %v481_v1, 0.0  ;;  %v531_v30 = vmax.f32 %v464_v28, 0.0  ;;  %v1264_v1 = vld [vmem:[%s1895_s3 + $0x44] sm:$0xf0] }
 0x13f   :  { %v1194_v5 = vor.u32 %v1264_v1, %v1193_v61 }
 0x140   :  { %v562_v11 = vpack.c.bf16 %v538_v12, %v537_v6  ;;  %v559_v41 = vpack.c.bf16 %v532_v31, %v531_v30  ;;  %v1263_v6 = vld [vmem:[%s1895_s3 + $0x44] sm:$0xf]  ;;  %v1195_v12 = vld [vmem:[%s1895_s3 + $0x48] sm:$0xf0]  ;;  %v1269_v30 = vld [vmem:[%s1895_s3 + $0x74] sm:$0xf] }
 0x141   :  { %v520_v8 = vpop.f32.mrf.mxu3  ;;  %v1198_v13 = vor.u32 %v1263_v6, %v1195_v12  ;;  %v1219_v31 = vld [vmem:[%s1895_s3 + $0x78] sm:$0xf0] }
 0x142   :  { %v521_v35 = vadd.f32 %v520_v8, %v1581_v27  ;;  %763 = vmatpush.bf16.msra.mxu1 %v562_v11  ;;  %v509_v27 = vadd.f32 %v508_v46, %v1617_v40  ;;  %v567_v40 = vpack.c.bf16 %v548_v34, %v547_v63  ;;  %v1260_v46 = vld [vmem:[%s1895_s3 + $0x24] sm:$0xf0]  ;;  %v1202_v11 = vor.u32 %v1266_v15, %v1201_v14  ;;  %v1265_v8 = vld [vmem:[%s1895_s3 + $0x54] sm:$0xf] }
 0x143   :  { %v1178_v47 = vor.u32 %v1260_v46, %v1177_v45  ;;  %v1206_v18 = vor.u32 %v1265_v8, %v1203_v17  ;;  %v1222_v10 = vor.u32 %v1269_v30, %v1219_v31 }
 0x144   :  { %v554_v23 = vmax.f32 %v521_v35, 0.0  ;;  %v549_v33 = vmax.f32 %v509_v27, 0.0  ;;  %v1268_v35 = vld [vmem:[%s1895_s3 + $0x64] sm:$0xf0]  ;;  %v1832_v25 = vpop.permute.xlu1 %660 }
 0x145   :  { %v1210_v28 = vor.u32 %v1268_v35, %v1209_v22 }
 0x146   :  { %764 = vmatpush.bf16.msra.mxu1 %v561_v21  ;;  %v570_v26 = vpack.c.bf16 %v554_v23, %v553_v20  ;;  %v568_v37 = vpack.c.bf16 %v550_v32, %v549_v33  ;;  %v1211_v20 = vld [vmem:[%s1895_s3 + $0x68] sm:$0xf0]  ;;  %v1830_v21 = vpop.permute.xlu2 %670  ;;  %v1848_v33 = vpop.permute.xlu0 %655 }
 0x147   :  { %v1214_v23 = vor.u32 %v1267_v48, %v1211_v20 }
 0x148   :  { %812 = vmatpush.bf16.msra.mxu2 %v570_v26  ;;  %v1218_v26 = vor.u32 %v1270_v42, %v1217_v4 }
 0x14a   :  { %765 = vmatpush.bf16.msra.mxu1 %v560_v57 }
 0x14c   :  { %813 = vmatpush.bf16.msra.mxu2 %v569_v24  ;;  %v636_v57 = vpop.permute.xlu1 %635 }
 0x14e   :  { %766 = vmatpush.bf16.msra.mxu1 %v559_v41  ;;  %v646_v27 = vpop.permute.xlu2 %645  ;;  %v1850_v50 = vpop.permute.xlu0 %650 }
 0x150   :  { %814 = vmatpush.bf16.msra.mxu2 %v568_v37 }
 0x152   :  { %767 = vmatpush.bf16.msra.mxu1 %v1713_v7 }
 0x154   :  { %815 = vmatpush.bf16.msra.mxu2 %v567_v40  ;;  %v631_v24 = vpop.permute.xlu1 %630 }
 0x156   :  { %768 = vmatpush.bf16.msra.mxu1 %v1706_v16  ;;  %v1255_v16 = vld [vmem:[%s1895_s3 + $0x4] sm:$0xf]  ;;  %v641_v32 = vpop.permute.xlu2 %640 }
 0x158   :  { %816 = vmatpush.bf16.msra.mxu2 %v1716_v38  ;;  %v1257_v38 = vld [vmem:[%s1895_s3 + $0x14] sm:$0xf] }
 0x15a   :  { %769 = vmatpush.bf16.msra.mxu1 %v1702_v53  ;;  %v1163_v53 = vld [vmem:[%s1895_s3 + $0x8] sm:$0xf0] }
 0x15b   :  { %v1166_v7 = vor.u32 %v1255_v16, %v1163_v53 }
 0x15c   :  { %817 = vmatpush.bf16.msra.mxu2 %v1708_v9  ;;  %v1169_v9 = vld [vmem:[%s1895_s3 + $0x10] sm:$0xf]  ;;  %v606_v37 = vpop.permute.xlu1 %605 }
 0x15e   :  { %770 = vmatpush.bf16.msra.mxu1 %v1698_v29  ;;  %v1258_v29 = vld [vmem:[%s1895_s3 + $0x14] sm:$0xf0]  ;;  %v616_v41 = vpop.permute.xlu2 %615 }
 0x160   :  { %818 = vmatpush.bf16.msra.mxu2 %v1704_v0  ;;  %v1170_v0 = vor.u32 %v1258_v29, %v1169_v9 }
 0x161   :  { %771 = vmatmul.bf16.vlgmr.msra.gmra.mxu1 %v1162_v43 }
 0x164   :  { %819 = vmatpush.bf16.msra.mxu2 %v1700_v39  ;;  %v1174_v39 = vor.u32 %v1257_v38, %v1171_v44  ;;  %v626_v38 = vpop.permute.xlu0 %625 }
 0x166   :  { %v611_v16 = vpop.permute.xlu2 %610 }
 0x167   :  { %820 = vmatmul.bf16.vlgmr.msra.gmra.mxu2 %v1166_v7 }
 0x16c   :  { %v621_v51 = vpop.permute.xlu0 %620 }
 0x171   :  { %776 = vmatmul.bf16.gmra.mxu1 %v1170_v0 }
 0x177   :  { %825 = vmatmul.bf16.gmra.mxu2 %v1174_v39 }
 0x181   :  { %781 = vmatmul.bf16.gmra.mxu1 %v1178_v47 }
 0x187   :  { %830 = vmatmul.bf16.gmra.mxu2 %v1182_v52 }
 0x191   :  { %786 = vmatmul.bf16.gmra.mxu1 %v1186_v58 }
 0x197   :  { %835 = vmatmul.bf16.gmra.mxu2 %v1190_v60 }
 0x1a1   :  { %791 = vmatmul.bf16.gmra.mxu1 %v1194_v5 }
 0x1a7   :  { %840 = vmatmul.bf16.gmra.mxu2 %v1198_v13 }
 0x1b1   :  { %796 = vmatmul.bf16.gmra.mxu1 %v1202_v11 }
 0x1b7   :  { %845 = vmatmul.bf16.gmra.mxu2 %v1206_v18 }
 0x1c1   :  { %801 = vmatmul.bf16.gmra.mxu1 %v1210_v28 }
 0x1c7   :  { %850 = vmatmul.bf16.gmra.mxu2 %v1214_v23 }
 0x1d1   :  { %806 = vmatmul.bf16.gmra.mxu1 %v1218_v26 }
 0x1d7   :  { %855 = vmatmul.bf16.gmra.mxu2 %v1222_v10 }
 0x1de   :  { %v772_v3 = vpop.f32.mrf.mxu1 }
 0x1df   :  { %v773_v63 = vadd.f32 %v772_v3, %v606_v37 }
 0x1e6   :  { %v774_v34 = vpop.f32.mrf.mxu1 }
 0x1e7   :  { %v775_v53 = vadd.f32 %v774_v34, %v611_v16 }
 0x1ea   :  { %v821_v40 = vpop.f32.mrf.mxu2 }
 0x1eb   :  { %v822_v49 = vadd.f32 %v821_v40, %v773_v63 }
 0x1ed   :  { %v861_v29 = vmax.f32 %v822_v49, 0.0 }
 0x1ee   :  { %v777_v43 = vpop.f32.mrf.mxu1 }
 0x1ef   :  { %v778_v45 = vadd.f32 %v777_v43, %v616_v41 }
 0x1f2   :  { %v823_v7 = vpop.f32.mrf.mxu2 }
 0x1f3   :  { %v824_v9 = vadd.f32 %v823_v7, %v775_v53 }
 0x1f5   :  { %v862_v0 = vmax.f32 %v824_v9, 0.0 }
 0x1f6   :  { %v779_v44 = vpop.f32.mrf.mxu1 }
 0x1f7   :  { %v1852_v39 = vpack.c.bf16 %v862_v0, %v861_v29  ;;  %v780_v52 = vadd.f32 %v779_v44, %v621_v51 }
 0x1fa   :  { %v826_v46 = vpop.f32.mrf.mxu2 }
 0x1fb   :  { %v827_v47 = vadd.f32 %v826_v46, %v778_v45 }
 0x1fd   :  { %v863_v58 = vmax.f32 %v827_v47, 0.0 }
 0x1fe   :  { %v782_v62 = vpop.f32.mrf.mxu1 }
 0x1ff   :  { %v783_v61 = vadd.f32 %v782_v62, %v626_v38 }
 0x202   :  { %v828_v54 = vpop.f32.mrf.mxu2 }
 0x203   :  { %v829_v56 = vadd.f32 %v828_v54, %v780_v52 }
 0x205   :  { %v864_v59 = vmax.f32 %v829_v56, 0.0 }
 0x206   :  { %v784_v2 = vpop.f32.mrf.mxu1 }
 0x207   :  { %v1854_v60 = vpack.c.bf16 %v864_v59, %v863_v58  ;;  %v785_v12 = vadd.f32 %v784_v2, %v631_v24 }
 0x20a   :  { %v831_v1 = vpop.f32.mrf.mxu2 }
 0x20b   :  { %v832_v5 = vadd.f32 %v831_v1, %v783_v61 }
 0x20d   :  { %v865_v15 = vmax.f32 %v832_v5, 0.0 }
 0x20e   :  { %v787_v6 = vpop.f32.mrf.mxu1 }
 0x20f   :  { %v788_v18 = vadd.f32 %v787_v6, %v636_v57  ;;  %v1273_v6 = vld [vmem:[%s1896_s5 + $0x10] sm:$0xff] }
 0x212   :  { %v833_v13 = vpop.f32.mrf.mxu2 }
 0x213   :  { %v834_v14 = vadd.f32 %v833_v13, %v785_v12  ;;  %v1272_v12 = vld [vmem:[%s1896_s5 + $0x8] sm:$0xff]  ;;  %v904_v13 = vpop.permute.xlu0 %903 }
 0x215   :  { %v866_v11 = vmax.f32 %v834_v14, 0.0  ;;  %v909_v14 = vpop.permute.xlu1 %908 }
 0x216   :  { %v789_v8 = vpop.f32.mrf.mxu1 }
 0x217   :  { %v1856_v17 = vpack.c.bf16 %v866_v11, %v865_v15  ;;  %v790_v48 = vadd.f32 %v789_v8, %v641_v32  ;;  %v914_v15 = vpop.permute.xlu2 %913 }
 0x21a   :  { %v836_v22 = vpop.f32.mrf.mxu2 }
 0x21b   :  { %v837_v35 = vadd.f32 %v836_v22, %v788_v18  ;;  %v919_v11 = vpop.permute.xlu0 %918 }
 0x21d   :  { %v867_v4 = vmax.f32 %v837_v35, 0.0 }
 0x21e   :  { %v792_v28 = vpop.f32.mrf.mxu1 }
 0x21f   :  { %v793_v31 = vadd.f32 %v792_v28, %v646_v27  ;;  %v1013_v18 = vpop.permute.xlu2 %1012 }
 0x222   :  { %v838_v20 = vpop.f32.mrf.mxu2 }
 0x223   :  { %v839_v23 = vadd.f32 %v838_v20, %v790_v48 }
 0x225   :  { %v868_v42 = vmax.f32 %v839_v23, 0.0 }
 0x226   :  { %v794_v26 = vpop.f32.mrf.mxu1 }
 0x227   :  { %v880_v30 = vpack.c.bf16 %v868_v42, %v867_v4  ;;  %v929_v48 = vpop.permute.xlu2 %928 }
 0x22a   :  { %v841_v10 = vpop.f32.mrf.mxu2 }
 0x22b   :  { %v842_v24 = vadd.f32 %v841_v10, %v793_v31 }
 0x22d   :  { %v869_v5 = vmax.f32 %v842_v24, 0.0 }
 0x22e   :  { %v797_v3 = vpop.f32.mrf.mxu1 }
 0x22f   :  { %v798_v52 = vadd.f32 %v797_v3, %v1848_v33 }
 0x232   :  { %v843_v41 = vpop.f32.mrf.mxu2 }
 0x236   :  { %v799_v34 = vpop.f32.mrf.mxu1 }
 0x237   :  { %v800_v46 = vadd.f32 %v799_v34, %v1832_v25 }
 0x23a   :  { %v846_v37 = vpop.f32.mrf.mxu2 }
 0x23b   :  { %v847_v58 = vadd.f32 %v846_v37, %v798_v52 }
 0x23d   :  { %v871_v61 = vmax.f32 %v847_v58, 0.0 }
 0x23e   :  { %v802_v63 = vpop.f32.mrf.mxu1 }
 0x23f   :  { %v803_v38 = vadd.f32 %v802_v63, %v1822_v19  ;;  %v1033_v63 = vpop.permute.xlu2 %1032 }
 0x242   :  { %v848_v40 = vpop.f32.mrf.mxu2 }
 0x243   :  { %v849_v54 = vadd.f32 %v848_v40, %v800_v46 }
 0x245   :  { %v872_v19 = vmax.f32 %v849_v54, 0.0 }
 0x246   :  { %v804_v57 = vpop.f32.mrf.mxu1 }
 0x247   :  { %v805_v9 = vadd.f32 %v804_v57, %v1830_v21  ;;  %v795_v21 = vadd.f32 %v794_v26, %v1850_v50  ;;  %v882_v1 = vpack.c.bf16 %v872_v19, %v871_v61  ;;  %v1271_v50 = vld [vmem:[%s1896_s5] sm:$0xff] }
 0x249   :  { %v844_v59 = vadd.f32 %v843_v41, %v795_v21 }
 0x24a   :  { %v851_v49 = vpop.f32.mrf.mxu2 }
 0x24b   :  { %v852_v47 = vadd.f32 %v851_v49, %v803_v38  ;;  %v870_v25 = vmax.f32 %v844_v59, 0.0 }
 0x24d   :  { %v881_v33 = vpack.c.bf16 %v870_v25, %v869_v5 }
 0x24e   :  { %v807_v16 = vpop.f32.mrf.mxu1 }
 0x24f   :  { %v808_v7 = vadd.f32 %v807_v16, %v1820_v36 }
 0x252   :  { %v853_v43 = vpop.f32.mrf.mxu2 }
 0x253   :  { %v854_v44 = vadd.f32 %v853_v43, %v805_v9 }
 0x255   :  { %v874_v56 = vmax.f32 %v854_v44, 0.0 }
 0x256   :  { %v809_v53 = vpop.f32.mrf.mxu1 }
 0x257   :  { %v810_v27 = vadd.f32 %v809_v53, %v1846_v55  ;;  %v873_v55 = vmax.f32 %v852_v47, 0.0 }
 0x259   :  { %v883_v2 = vpack.c.bf16 %v874_v56, %v873_v55 }
 0x25a   :  { %v856_v32 = vpop.f32.mrf.mxu2 }
 0x25b   :  { %v857_v29 = vadd.f32 %v856_v32, %v808_v7 }
 0x25d   :  { %v875_v62 = vmax.f32 %v857_v29, 0.0 }
 0x262   :  { %v858_v0 = vpop.f32.mrf.mxu2 }
 0x263   :  { %v859_v45 = vadd.f32 %v858_v0, %v810_v27 }
 0x265   :  { %v876_v51 = vmax.f32 %v859_v45, 0.0 }
 0x267   :  { %v884_v36 = vpack.c.bf16 %v876_v51, %v875_v62 }
 0x269   :  { %965 = vmatpush.bf16.msrb.mxu1 %v884_v36  ;;  %1283 = vmatpush.bf16.msrb.mxu2 %v884_v36  ;;  %v1043_v36 = vpop.permute.xlu2 %1042 }
 0x26d   :  { %966 = vmatpush.bf16.msrb.mxu1 %v883_v2  ;;  %1284 = vmatpush.bf16.msrb.mxu2 %v883_v2 }
 0x271   :  { %967 = vmatpush.bf16.msrb.mxu1 %v882_v1  ;;  %1285 = vmatpush.bf16.msrb.mxu2 %v882_v1 }
 0x275   :  { %968 = vmatpush.bf16.msrb.mxu1 %v881_v33  ;;  %1286 = vmatpush.bf16.msrb.mxu2 %v881_v33 }
 0x279   :  { %969 = vmatpush.bf16.msrb.mxu1 %v880_v30  ;;  %1287 = vmatpush.bf16.msrb.mxu2 %v880_v30 }
 0x27d   :  { %970 = vmatpush.bf16.msrb.mxu1 %v1856_v17  ;;  %1288 = vmatpush.bf16.msrb.mxu2 %v1856_v17  ;;  %v924_v17 = vpop.permute.xlu1 %923 }
 0x281   :  { %971 = vmatpush.bf16.msrb.mxu1 %v1854_v60  ;;  %1289 = vmatpush.bf16.msrb.mxu2 %v1854_v60  ;;  %v1274_v60 = vld [vmem:[%s1896_s5 + $0x18] sm:$0xff] }
 0x285   :  { %972 = vmatpush.bf16.msrb.mxu1 %v1852_v39  ;;  %1290 = vmatpush.bf16.msrb.mxu2 %v1852_v39  ;;  %v1018_v39 = vpop.permute.xlu0 %1017  ;;  %v1023_v28 = vpop.permute.xlu1 %1022 }
 0x288   :  { %973 = vmatmul.bf16.vlgmr.msrb.gmra.mxu1 %v1271_v50  ;;  %983 = vmatmul.bf16.vlgmr.msrb.gmra.mxu2 %v1273_v6  ;;  %v1072_v50 = vstv %s1897_s8 }
 0x28d   :  { %v1028_v4 = vpop.permute.xlu0 %1027  ;;  %v934_v3 = vpop.permute.xlu1 %933 }
 0x295   :  { %v939_v32 = vpop.permute.xlu0 %938  ;;  %v1038_v51 = vpop.permute.xlu1 %1037 }
 0x298   :  { %978 = vmatmul.bf16.gmra.mxu1 %v1272_v12  ;;  %988 = vmatmul.bf16.gmra.mxu2 %v1274_v60 }
 0x29d   :  { %v1048_v55 = vpop.permute.xlu0 %1047 }
 0x305   :  { %v974_v8 = vpop.f32.mrf.mxu1 }
 0x306   :  { %v975_v26 = vadd.f32 %v974_v8, %v904_v13 }
 0x308   :  { %v994_v10 = vmax.f32 %v975_v26, 0.0 }
 0x30a   :  { %v1050_v57 = vmul.f32 %v1013_v18, %v994_v10 }
 0x30b   :  { %v984_v22 = vpop.f32.mrf.mxu2 }
 0x30c   :  { %v985_v34 = vadd.f32 %v984_v22, %v924_v17 }
 0x30d   :  { %v976_v35 = vpop.f32.mrf.mxu1 }
 0x30e   :  { %v977_v23 = vadd.f32 %v976_v35, %v909_v14  ;;  %v998_v53 = vmax.f32 %v985_v34, 0.0 }
 0x310   :  { %v995_v31 = vmax.f32 %v977_v23, 0.0  ;;  %v1054_v45 = vmul.f32 %v1033_v63, %v998_v53 }
 0x312   :  { %v1051_v37 = vmul.f32 %v1018_v39, %v995_v31 }
 0x313   :  { %v986_v20 = vpop.f32.mrf.mxu2 }
 0x314   :  { %v987_v49 = vadd.f32 %v986_v20, %v929_v48  ;;  %v1058_v7 = vadd.f32 %v1051_v37, %v1050_v57 }
 0x315   :  { %v979_v42 = vpop.f32.mrf.mxu1 }
 0x316   :  { %v980_v30 = vadd.f32 %v979_v42, %v914_v15  ;;  %v999_v29 = vmax.f32 %v987_v49, 0.0 }
 0x318   :  { %v996_v24 = vmax.f32 %v980_v30, 0.0  ;;  %v1055_v52 = vmul.f32 %v1038_v51, %v999_v29 }
 0x31a   :  { %v1052_v43 = vmul.f32 %v1023_v28, %v996_v24 }
 0x31b   :  { %v989_v41 = vpop.f32.mrf.mxu2 }
 0x31c   :  { %v990_v9 = vadd.f32 %v989_v41, %v934_v3  ;;  %v1059_v0 = vadd.f32 %v1058_v7, %v1052_v43 }
 0x31d   :  { %v981_v40 = vpop.f32.mrf.mxu1 }
 0x31e   :  { %v982_v16 = vadd.f32 %v981_v40, %v919_v11  ;;  %v1000_v46 = vmax.f32 %v990_v9, 0.0 }
 0x320   :  { %v997_v27 = vmax.f32 %v982_v16, 0.0  ;;  %v1056_v21 = vmul.f32 %v1043_v36, %v1000_v46 }
 0x322   :  { %v1053_v38 = vmul.f32 %v1028_v4, %v997_v27 }
 0x323   :  { %v991_v44 = vpop.f32.mrf.mxu2 }
 0x324   :  { %v1060_v47 = vadd.f32 %v1059_v0, %v1053_v38  ;;  %v992_v62 = vadd.f32 %v991_v44, %v939_v32 }
 0x326   :  { %v1061_v54 = vadd.f32 %v1060_v47, %v1054_v45  ;;  %v1001_v56 = vmax.f32 %v992_v62, 0.0 }
 0x328   :  { %v1062_v58 = vadd.f32 %v1061_v54, %v1055_v52  ;;  %v1057_v59 = vmul.f32 %v1048_v55, %v1001_v56 }
 0x32a   :  { %v1063_v19 = vadd.f32 %v1062_v58, %v1056_v21 }
 0x32c   :  { %v1064_v2 = vadd.f32 %v1063_v19, %v1057_v59 }
 0x32e   :  { %v1065_v61 = vrot.slane %v1064_v2, 4 }
 0x330   :  { %v1066_v25 = vadd.f32 %v1065_v61, %v1064_v2 }
 0x332   :  { %v1067_v1 = vrot.slane %v1066_v25, 2 }
 0x334   :  { %v1068_v5 = vadd.f32 %v1067_v1, %v1066_v25 }
 0x336   :  { %v1069_v33 = vrot.slane %v1068_v5, 1 }
 0x338   :  { %v1070_v6 = vadd.f32 %v1069_v33, %v1068_v5 }
 0x33a   :  { %v1073_v12 = vadd.f32 %v1072_v50, %v1070_v6 }
 0x33c   :  { %1074 = vst [vmem:[%s1898_s9] sm:$0x1] %v1073_v12 }

</bundles_post_ra>
